<compile_context>
chip_gen: v7x
topology: tpu7x:2x2x1
jax: 0.10.0
libtpu: 0.0.40
codegen_flags: <defaults>
</compile_context>

<pallas_src>
import jax
import jax.numpy as jnp
from jax.experimental import pallas as pl
from jax.experimental.pallas import tpu as pltpu


def _gpconv_kernel(x_ref, w_ref, o_ref):
    # x_ref: (1, C_in,  TM)  one image's channel slab, pixel tile in the lanes
    # w_ref: (C_out, C_in)   block-diagonal fused weight (VMEM-resident)
    # o_ref: (1, C_out, TM)
    o_ref[0] = jnp.dot(
        w_ref[...], x_ref[0], preferred_element_type=jnp.float32
    ).astype(o_ref.dtype)


def _choose_pixel_tile(m_total, c_in, c_out, dtype_bytes, budget_bytes=8 << 20):
    """Largest multiple-of-128 pixel tile that divides m_total and keeps the
    double-buffered input+output tiles under a conservative VMEM budget."""
    per_pixel = 2 * (c_in + c_out) * dtype_bytes  # 2 buffers x (in + out) per pixel
    max_tm = max(128, budget_bytes // max(per_pixel, 1))
    for tm in (4096, 2048, 1024, 512, 256, 128):
        if tm <= max_tm and m_total % tm == 0:
            return tm
    return m_total  # small / odd spatial size: take the whole row (still correct)


def gpconv_forward(x_nchw, weights_torch_layout):
    """GPConv forward.

    x_nchw:               (N, in_planes, H, W)
    weights_torch_layout: (G, sub_out, sub_in, 1, 1) -- one Conv2d weight per group
    returns:              (N, out_planes, H, W)
    """
    N, C, H, W = x_nchw.shape
    G, sub_out, sub_in = weights_torch_layout.shape[:3]
    assert C == G * sub_in
    c_out = G * sub_out
    m_total = H * W

    # NCHW -> (N, C, M): pure reshape, no data movement.
    x3 = x_nchw.reshape(N, C, m_total)

    # Fuse per-group 1x1 conv weights into a single block-diagonal (C_out, C_in)
    # matrix; row block g uses only columns of input group g, which reproduces
    # torch.chunk(dim=1) + per-group conv + torch.cat(dim=1) exactly.
    w_g = weights_torch_layout.reshape(G, sub_out, sub_in).astype(x_nchw.dtype)
    w_bd = jnp.zeros((c_out, C), dtype=x_nchw.dtype)
    for g in range(G):
        w_bd = w_bd.at[
            g * sub_out:(g + 1) * sub_out, g * sub_in:(g + 1) * sub_in
        ].set(w_g[g])

    tm = _choose_pixel_tile(m_total, C, c_out, jnp.dtype(x_nchw.dtype).itemsize)
    grid = (N, m_total // tm)

    y3 = pl.pallas_call(
        _gpconv_kernel,
        out_shape=jax.ShapeDtypeStruct((N, c_out, m_total), x_nchw.dtype),
        grid_spec=pltpu.PrefetchScalarGridSpec(
            num_scalar_prefetch=0,
            grid=grid,
            in_specs=[
                # Pixel-tiled activations: lane-dense (TM multiple of 128).
                pl.BlockSpec((1, C, tm), lambda n, m: (n, 0, m)),
                # Fused weight: constant index_map -> single DMA, stays resident.
                pl.BlockSpec((c_out, C), lambda n, m: (0, 0)),
            ],
            out_specs=pl.BlockSpec((1, c_out, tm), lambda n, m: (n, 0, m)),
        ),
        compiler_params=pltpu.CompilerParams(
            dimension_semantics=("parallel", "parallel"),
            vmem_limit_bytes=32 * 1024 * 1024,
        ),
    )(x3, w_bd)

    return y3.reshape(N, c_out, H, W)


if __name__ == "__main__":
    # Module config: GPConv(in_planes=8, out_planes=8, kernel_sizes=[3, 5]).
    in_planes, out_planes = 8, 8
    kernel_sizes = [3, 5]
    G = len(kernel_sizes)
    sub_in = in_planes // G
    sub_out = out_planes // G

    N, H, W = 2, 16, 16

    key = jax.random.PRNGKey(0)
    kx, kw = jax.random.split(key)
    x = jax.random.normal(kx, (N, in_planes, H, W), dtype=jnp.float32)
    # Deterministic per-group Conv2d weights, shape (G, sub_out, sub_in, 1, 1).
    weights = 0.1 * jax.random.normal(
        kw, (G, sub_out, sub_in, 1, 1), dtype=jnp.float32
    )

    out = gpconv_forward(x, weights)
    jax.block_until_ready(out)

    # Pure-JAX reference (per-group 1x1 conv == channel matmul).
    refs = []
    for g in range(G):
        xg = x[:, g * sub_in:(g + 1) * sub_in]          # (N, sub_in, H, W)
        wg = weights[g, :, :, 0, 0]                     # (sub_out, sub_in)
        refs.append(jnp.einsum("nchw,oc->nohw", xg, wg))
    ref = jnp.concatenate(refs, axis=1)

    assert out.shape == (N, out_planes, H, W)
    assert jnp.allclose(out, ref, atol=1e-5, rtol=1e-5)
    print("KERNEL_OK")
</pallas_src>

<mosaic_0001>
module attributes {stable_mosaic.version = 11 : i64} {
  func.func @_gpconv_kernel(%arg0: i32, %arg1: i32, %arg2: memref<1x8x256xf32, #tpu.memory_space<vmem>>, %arg3: memref<8x8xf32, #tpu.memory_space<vmem>>, %arg4: memref<1x8x256xf32, #tpu.memory_space<vmem>>) attributes {dimension_semantics = [#tpu.dimension_semantics<parallel>, #tpu.dimension_semantics<parallel>], iteration_bounds = array<i64: 2, 1>, scalar_prefetch = 0 : i64, scratch_operands = 0 : i64, tpu.core_type = #tpu.core_type<tc>, window_params = [{transform_indices = @transform_0, window_bounds = array<i64: 1, 8, 256>}, {pipeline_mode = #tpu.pipeline_mode<synchronous>, transform_indices = @transform_1, window_bounds = array<i64: 8, 8>}, {transform_indices = @transform_2, window_bounds = array<i64: 1, 8, 256>}]} {
    %c0 = arith.constant 0 : index
    %c0_0 = arith.constant 0 : index
    %0 = vector.load %arg3[%c0, %c0_0] : memref<8x8xf32, #tpu.memory_space<vmem>>, vector<8x8xf32>
    %c0_1 = arith.constant 0 : index
    %c0_2 = arith.constant 0 : index
    %c0_3 = arith.constant 0 : index
    %1 = vector.load %arg2[%c0_1, %c0_2, %c0_3] : memref<1x8x256xf32, #tpu.memory_space<vmem>>, vector<1x8x256xf32>
    %2 = vector.shape_cast %1 : vector<1x8x256xf32> to vector<8x256xf32>
    %cst = arith.constant dense<0.000000e+00> : vector<8x256xf32>
    %3 = tpu.matmul %0, %2, %cst {dimension_numbers = #tpu.dot_dimension_numbers<[1], [0], [0], [1], [0, 0, 1, 1], [], []>} : vector<8x8xf32>, vector<8x256xf32>, vector<8x256xf32> -> vector<8x256xf32>
    %c0_4 = arith.constant 0 : index
    %c0_5 = arith.constant 0 : index
    %c0_6 = arith.constant 0 : index
    %4 = vector.load %arg4[%c0_4, %c0_5, %c0_6] : memref<1x8x256xf32, #tpu.memory_space<vmem>>, vector<1x8x256xf32>
    %5 = vector.shape_cast %4 : vector<1x8x256xf32> to vector<8x256xf32>
    %6 = vector.shape_cast %3 : vector<8x256xf32> to vector<1x8x256xf32>
    tpu.vector_store %arg4[%c0_4, %c0_5, %c0_6], %6 {strides = array<i32>} : memref<1x8x256xf32, #tpu.memory_space<vmem>>, vector<1x8x256xf32>,
    return
  }
  func.func @transform_0(%arg0: i32, %arg1: i32) -> (i32, i32, i32) {
    %c0_i32 = arith.constant 0 : i32
    %c0_i32_0 = arith.constant 0 : i32
    return %arg0, %c0_i32, %arg1 : i32, i32, i32
  }
  func.func @transform_1(%arg0: i32, %arg1: i32) -> (i32, i32) {
    %c0_i32 = arith.constant 0 : i32
    %c0_i32_0 = arith.constant 0 : i32
    %c0_i32_1 = arith.constant 0 : i32
    return %c0_i32, %c0_i32_0 : i32, i32
  }
  func.func @transform_2(%arg0: i32, %arg1: i32) -> (i32, i32, i32) {
    %c0_i32 = arith.constant 0 : i32
    %c0_i32_0 = arith.constant 0 : i32
    return %arg0, %c0_i32, %arg1 : i32, i32, i32
  }
}

</mosaic_0001>

<bundles_post_ra>
// kernel: tpu_custom_call.1
= control target key start
LH: loop header
LB: loop body
LE: loop exit
PB: predicated region body
PF: predicated region fallthrough
CT: control target
= control target key end

     0   :  { %7 = vsyncpa [#allocation3], 0  ;;  %s859_s0 = inlined_call_operand.hbm [shape: f32[2,8,256], index: 0, kind: input, shape index: {}]   ;;  %s860_s1 = inlined_call_operand.hbm [shape: f32[8,8], index: 1, kind: input, shape index: {}]   ;;  %s861_s2 = inlined_call_operand.hbm [shape: f32[2,8,256], index: 2, kind: output, shape index: {}]  }
   0x1   :  { %9 = vsyncpa [#allocation3 + $0x1], 0 }
   0x2   :  { %10 = vsyncpa [#allocation6], 0 }
   0x3   :  { %11 = vsyncpa [#allocation4], 0 }
   0x4   :  { %13 = vsyncpa [#allocation4 + $0x1], 0  ;;  %s643_s9 = smov 0   ;;  %s645_s10 = smov 0  }
   0x5   :  { %s647_s11 = smov 0   ;;  %s649_s12 = smov 0  }
   0x6   :  { %s651_s13 = smov 0   ;;  %s653_s14 = smov 0  }
   0x7 LB: > { %s384_s15 = sadd.s32 4294967295, %s622_s14   ;;  %s385_s16 = sadd.s32 4294967294, %s622_s14   ;;  %s622_s14 = sphi %s653_s14, %s19_s14   ;;  %s618_s13 = sphi %s651_s13, %s886_s13   ;;  %s614_s12 = sphi %s649_s12, %s885_s12   ;;  %s610_s11 = sphi %s647_s11, %s884_s11   ;;  %s606_s10 = sphi %s645_s10, %s883_s10   ;;  %s602_s9 = sphi %s643_s9, %s882_s9  }
   0x8   : > { %p53_p0 = scmp.ne.s32.totalorder %s606_s10, %s602_s9  ;;  %p677_p1 = scmp.eq.s32.totalorder %s384_s15, 0 }
   0x9   : > { %p681_p2 = scmp.eq.s32.totalorder %s384_s15, 1  ;;  %p106_p3 = scmp.eq.s32.totalorder %s385_s16, 1 }
   0xa   : > { %s866_s17 = scalar_select %p677_p1, 1, 0 }
   0xb   : > { %s867_s18 = scalar_select %p681_p2, 1, 0 }
   0xc   : > { %p687_p4 = por %p677_p1, %p53_p0  ;;  %p386_p5 = scmp.ge.s32.totalorder %s622_s14, 1 }
   0xd   : > { %p692_p6 = por %p106_p3, %p53_p0  ;;  %p113_p7 = scmp.lt.s32.totalorder %s622_s14, 3 }
   0xe   : > { %s868_s19 = scalar_select %p687_p4, 1, 0 }
   0xf   : > { %s869_s20 = scalar_select %p692_p6, 1, 0 }
  0x10   : > { %p697_p8 = pnand %p386_p5, %p113_p7  ;;  %s624_s22 = smov [#allocation5]  }
  0x11   : > { %s126_s23 = sshll.u32 %s624_s22, 4  ;;  %s31_s25 = sadd.s32 1, %s618_s13  ;;  %s127_s23 = int_to_ptr.vmem [resolvable:$true] %s126_s23 }
  0x12   : > { %s870_s21 = scalar_select %p697_p8, 1, 0 }
  0x13   : > { %p412_p10 = pneg %p697_p8  ;;  %s40_s26 = sadd.s32 1, %s610_s11 }
  0x14   : > { %p712_p12 = scmp.ge.s32.totalorder %s31_s25, 2  ;;  %s478_s30 = scalar_lea.hbm %s860_s1, 128 }
  0x15   : > { %p706_p11 = pnand %p412_p10, %p677_p1  ;;  %p479_p13 = scmp.ne.s32.totalorder %s860_s1, %s478_s30 }
  0x16   : > { %s872_s27 = scalar_select %p712_p12, 1, 0 }
  0x17   : > { %p480_p0 = pneg %p706_p11  ;;  %p485_p7 = scmp.lt.u32.totalorder %s478_s30, %s860_s1 }
  0x19   : > { %p481_p3 = pnand %p480_p0, %p479_p13 }
  0x1b   : > { %p482_p5 = pneg %p481_p3 }
  0x1d   : > { %p487_p10 = pnand %p485_p7, %p482_p5 }
  0x1f   : > { %490 = shalt.err (!%p487_p10)
}
  0x20   : > { %s491_s7 = scalar_lea.vmem %s127_s23, 128  ;;  %p499_p4 = scmp.lt.s32.totalorder %s127_s23, %s127_s23 }
  0x21   : > { %p492_p9 = scmp.ne.s32.totalorder %s127_s23, %s491_s7  ;;  %p500_p8 = scmp.lt.s32.totalorder %s491_s7, %s491_s7 }
  0x23   : > { %p494_p6 = pnand %p492_p9, %p480_p0  ;;  %p501_p2 = por %p500_p8, %p499_p4 }
  0x25   : > { %p495_p1 = pneg %p494_p6 }
  0x27   : > { %p502_p12 = pnand %p501_p2, %p495_p1 }
  0x29   : > { %505 = shalt.err (!%p502_p12)
}
  0x2a   : > { %415 = dma.hbm_to_vmem [thread:$0]  (!%p706_p11), %s860_s1, 128, %s127_s23, [#allocation6]  }
  0x2b   : > { %p873_p4 = scmp.ne.s32.totalorder %s872_s27, 0  ;;  %p47_p1 = scmp.ne.s32.totalorder %s610_s11, %s606_s10 }
  0x2c   : > { %p48_p2 = scmp.eq.s32.totalorder %s622_s14, 0  ;;  %p425_p6 = scmp.lt.s32.totalorder %s622_s14, 2 }
  0x2d   : > { %s888_s25 = smov (%p873_p4, %s31_s25), 0  ;;  %p874_p12 = scmp.ne.s32.totalorder %s867_s18, 0 }
  0x2e   : > { %s35_s16 = ssub.s32 %s618_s13, %s888_s25  ;;  %p49_p9 = por %p48_p2, %p47_p1 }
  0x2f   : > { %p38_p8 = scmp.eq.s32.totalorder %s35_s16, 0  ;;  %p744_p13 = por %p874_p12, %p47_p1 }
  0x30   : > { %s137_s24 = sand.u32 1, %s610_s11   ;;  %s402_s27 = sshll.u32 %s618_s13, 8 }
  0x31   : > { %s752_s28 = scalar_select %p38_p8, %s610_s11, %s40_s26  }
  0x32   : > { %s389_s23 = sshll.u32 %s137_s24, 4  ;;  %s758_s3 = scalar_lea.hbm %s859_s0, %s402_s27 }
  0x33   : > { %s141_s18 = scalar_lea.vmem [#allocation2], %s389_s23  ;;  %p762_p11 = pnand %p425_p6, %p49_p9 }
  0x34   : > { %s151_s4 = sshll.u32 %s141_s18, 4  ;;  %s138_s26 = scalar_lea.sflag [#allocation3], %s137_s24  ;;  %s760_s4 = int_to_ptr.vmem [resolvable:$true] %s151_s4 }
  0x35   : > { %s506_s6 = scalar_lea.hbm %s758_s3, 256  ;;  %p508_p3 = pneg %p762_p11 }
  0x36   : > { %p507_p0 = scmp.ne.s32.totalorder %s758_s3, %s506_s6  ;;  %s511_s15 = scalar_lea.hbm %s859_s0, 512 }
  0x37   : > { %p512_p10 = scmp.lt.u32.totalorder %s758_s3, %s859_s0  ;;  %p513_p4 = scmp.lt.u32.totalorder %s511_s15, %s506_s6 }
  0x38   : > { %p509_p5 = pnand %p508_p3, %p507_p0  ;;  %p515_p2 = scmp.lt.u32.totalorder %s506_s6, %s758_s3 }
  0x39   : > { %p514_p1 = por %p513_p4, %p512_p10 }
  0x3a   : > { %p510_p7 = pneg %p509_p5 }
  0x3b   : > { %p516_p6 = por %p515_p2, %p514_p1 }
  0x3d   : > { %p517_p8 = pnand %p516_p6, %p510_p7 }
  0x3f   : > { %520 = shalt.err (!%p517_p8)
}
  0x40   : > { %s521_s24 = scalar_lea.vmem %s760_s4, 256  ;;  %s625_s27 = smov [#allocation2]  }
  0x41   : > { %p522_p9 = scmp.ne.s32.totalorder %s760_s4, %s521_s24  ;;  %s526_s29 = sshll.u32 %s625_s27, 4  ;;  %s527_s29 = int_to_ptr.vmem [resolvable:$false] %s526_s29 }
  0x42   : > { %s528_s30 = scalar_lea.vmem %s527_s29, 512  ;;  %p529_p5 = scmp.lt.s32.totalorder %s760_s4, %s527_s29 }
  0x43   : > { %p524_p12 = pnand %p522_p9, %p508_p3  ;;  %p530_p10 = scmp.lt.s32.totalorder %s528_s30, %s521_s24 }
  0x45   : > { %p525_p0 = pneg %p524_p12  ;;  %p531_p4 = por %p530_p10, %p529_p5 }
  0x47   : > { %p532_p1 = pnand %p531_p4, %p525_p0 }
  0x49   : > { %535 = shalt.err (!%p532_p1)
}
  0x4a   : > { %419 = dma.hbm_to_vmem [thread:$0]  (!%p762_p11), %s758_s3, 256, %s760_s4, %s138_s26  }
  0x4b   : > { %p877_p7 = scmp.ne.s32.totalorder %s870_s21, 0 }
  0x4c   : > { %s794_s18 = sand.u32 (!%p877_p7), 1, %s606_s10   ;;  %p878_p3 = scmp.ne.s32.totalorder (!%p877_p7), %s868_s19, 0 }
  0x4d   : > { %160 = sbr.rel (%p877_p7) target bundleno = 318 (0x13e), region = 28  ;;  %s393_s6 = sshll.u32 (!%p877_p7), %s794_s18, 4 }
  0x4e   : > { %s163_s7 = scalar_lea.sflag (!%p877_p7), [#allocation3], %s794_s18  ;;  %s166_s8 = scalar_lea.vmem (!%p877_p7), [#allocation2], %s393_s6 }
  0x54   : > { %589 = dma.done.wait (%p878_p3), %s163_s7, 256  }
  0x55   : > { %591 = vsyncadd (%p878_p3), %s163_s7, 4294967040  ;;  %p879_p2 = scmp.ne.s32.totalorder %s866_s17, 0 }
  0x57   : > { %593 = dma.done.wait (%p879_p2), [#allocation6], 128  }
  0x58   : > { %595 = vsyncadd (%p879_p2), [#allocation6], 4294967168  ;;  %v626_v0 = vmov 0.0   ;;  %v195_v1 = vld [vmem:[%s166_s8 + $0x8] sm:$0xff]  ;;  %v194_v2 = vld [vmem:[%s166_s8] sm:$0xff]  ;;  %vm196_vm0 = vcmask 64512  }
  0x59   : > { %264 = vmatprep.mubr.f32.mxu0 %v626_v0  ;;  %v193_v3 = vld [vmem:[#allocation5] sm:$0xff]  ;;  %200 = vmatprep.subr.mxu0 %v195_v1  ;;  %s190_s19 = scalar_lea.vmem [#allocation7], %s393_s6  ;;  %s403_s3 = sshll.u32 %s614_s12, 8 }
  0x5a   : > { %201 = vmatpush1.msra.mxu0 %v194_v2  ;;  %s290_s21 = sshll.u32 %s190_s19, 4  ;;  %s812_s5 = scalar_lea.hbm %s861_s2, %s403_s3  ;;  %s807_s21 = int_to_ptr.vmem [resolvable:$true] %s290_s21 }
  0x5b   : > { %396 = vmatmul.mubr.msk.f32.vlgmr.msra.gmra.mrb[0].mxu0 %vm196_vm0, %v193_v3  ;;  %s274_s26 = scalar_lea.sflag [#allocation4], %s794_s18  ;;  %s536_s15 = scalar_lea.vmem %s807_s21, 256 }
  0x5c   : > { %p537_p11 = scmp.ne.s32.totalorder %s807_s21, %s536_s15  ;;  %s627_s12 = smov [#allocation7]  }
  0x5d   : > { %s540_s16 = sshll.u32 %s627_s12, 4  ;;  %s541_s16 = int_to_ptr.vmem [resolvable:$false] %s540_s16 }
  0x5e   : > { %p538_p6 = pnand %p537_p11, %p744_p13  ;;  %s542_s23 = scalar_lea.vmem %s541_s16, 512 }
  0x5f   : > { %p543_p9 = scmp.lt.s32.totalorder %s807_s21, %s541_s16  ;;  %p544_p12 = scmp.lt.s32.totalorder %s542_s23, %s536_s15 }
  0x60   : > { %p539_p8 = pneg %p538_p6 }
  0x61   : > { %p545_p0 = por %p544_p12, %p543_p9 }
  0x63   : > { %p546_p5 = pnand %p545_p0, %p539_p8 }
 0x12e   : > { %v266_v4 = vpop.f32.mrb[0].mxu0 }
 0x12f   : > { %271 = vst [vmem:[%s190_s19] sm:$0xff] %v266_v4  ;;  %v268_v5 = vpop.f32.mrb[1].mxu0 }
 0x130   : > { %272 = vst [vmem:[%s190_s19 + $0x8] sm:$0xff] %v268_v5 }
 0x131   : > { %549 = shalt.err (!%p546_p5)
}
 0x132   : > { %s550_s24 = scalar_lea.hbm %s812_s5, 256  ;;  %s554_s30 = scalar_lea.hbm %s861_s2, 512 }
 0x133   : > { %p551_p10 = scmp.ne.s32.totalorder %s812_s5, %s550_s24  ;;  %p555_p7 = scmp.lt.u32.totalorder %s812_s5, %s861_s2 }
 0x134   : > { %p556_p3 = scmp.lt.u32.totalorder %s554_s30, %s550_s24  ;;  %p558_p11 = scmp.lt.u32.totalorder %s550_s24, %s812_s5 }
 0x135   : > { %p552_p4 = pnand %p551_p10, %p744_p13 }
 0x136   : > { %p557_p2 = por %p556_p3, %p555_p7 }
 0x137   : > { %p553_p1 = pneg %p552_p4 }
 0x138   : > { %p559_p6 = por %p558_p11, %p557_p2 }
 0x13a   : > { %p560_p8 = pnand %p559_p6, %p553_p1 }
 0x13c   : > { %563 = shalt.err (!%p560_p8)
}
 0x13d   : > { %410 = dma.vmem_to_hbm [thread:$0]  (%p744_p13), %s807_s21, 256, %s812_s5, %s274_s26  }
 0x13e PF: > { %s302_s7 = sand.u32 1, %s602_s9   ;;  %p880_p9 = scmp.ne.s32.totalorder %s869_s20, 0 }
 0x13f   : > { %p881_p12 = scmp.ge.s32.totalorder %s622_s14, 2  ;;  %s303_s8 = scalar_lea.sflag [#allocation4], %s302_s7 }
 0x141   : > { %p421_p0 = pnand %p881_p12, %p880_p9 }
 0x143   : > { %597 = dma.done.wait (!%p421_p0), %s303_s8, 256  }
 0x144   : > { %599 = vsyncadd (!%p421_p0), %s303_s8, 4294967040  ;;  %s19_s14 = sadd.s32 1, %s622_s14   ;;  %s882_s9 = smov %s606_s10 }
 0x145   : > { %p16_p5 = scmp.ge.s32.totalorder %s19_s14, 4   ;;  %s883_s10 = smov %s610_s11 }
 0x146   : > { %s884_s11 = smov %s752_s28  ;;  %s885_s12 = smov %s618_s13 }
 0x147   : > { %s886_s13 = smov %s888_s25  ;;  %18 = sbr.rel (!%p16_p5) target bundleno = 7 (0x7), region = 77 }
 0x14e   :  { %308 = vsyncpa [#allocation3], 1 }
 0x14f   :  { %310 = vsyncpa [#allocation3 + $0x1], 1 }
 0x150   :  { %311 = vsyncpa [#allocation6], 1 }
 0x151   :  { %312 = vsyncpa [#allocation4], 1 }
 0x152   :  { %314 = vsyncpa [#allocation4 + $0x1], 1 }

</bundles_post_ra>
